<compile_context>
chip_gen: v7x
topology: tpu7x:2x2x1
jax: 0.10.0
libtpu: 0.0.40
codegen_flags: <defaults>
</compile_context>

<pallas_src>
import math

import jax
import jax.numpy as jnp
from jax.experimental import pallas as pl
from jax.experimental.pallas import tpu as pltpu


def _round_down_to_multiple(x: int, m: int) -> int:
    return max(m, (x // m) * m)


def forget_gate(inp, h0, c0, U1, V1, B1, *, seq_tile=512,
                vmem_budget_bytes=24 * 1024 * 1024):
    """inp: (b, s, in_dims); h0, c0: (b, hid); U1: (in, hid); V1: (hid, hid); B1: (hid,).

    Returns (F_all, c_final): F_all is (b, s, hid), c_final is (b, hid).
    """
    b, s, in_dims = inp.shape
    hid = U1.shape[1]
    out_dtype = inp.dtype
    out_itemsize = jnp.dtype(out_dtype).itemsize

    # ---- hoisted constant term: h_t is never updated inside the PyTorch loop ----
    hbias = (h0.astype(jnp.float32) @ V1.astype(jnp.float32)
             + B1.astype(jnp.float32)).reshape(b, 1, hid)
    u_f32 = U1.astype(jnp.float32)

    # ---- pick the sequence tile against an explicit VMEM budget ----------------
    def _vmem_need(ts_):
        x_t = ts_ * in_dims * 4           # x tile (f32)
        f_t = ts_ * hid * out_itemsize    # gate output tile
        p_t = hid * 4                     # partial-product tile
        hb_t = hid * 4                    # hoisted bias tile
        u_t = in_dims * hid * 4           # resident U1
        return 2 * (x_t + f_t + p_t + hb_t + u_t)   # double-buffered

    if s <= seq_tile:
        ts = s                                        # full dim: always legal
    else:
        ts = _round_down_to_multiple(seq_tile, 8)     # keep sublane-aligned tiles
        while _vmem_need(ts) > vmem_budget_bytes and ts > 8:
            ts = _round_down_to_multiple(ts // 2, 8)
    n_t = pl.cdiv(s, ts)

    def kernel(x_ref, hb_ref, u_ref, f_ref, p_ref):
        # x_ref: (ts, in_dims)   seq tile of inputs for one batch row
        # hb_ref: (1, hid)       hoisted h0 @ V1 + B1 for this batch row
        # u_ref: (in_dims, hid)  resident U1
        # f_ref: (ts, hid)       gate output tile
        # p_ref: (1, hid)        per-tile partial product of the gates
        pre = jnp.dot(x_ref[...], u_ref[...],
                      preferred_element_type=jnp.float32) + hb_ref[...]
        f = jax.nn.sigmoid(pre)                       # (ts, hid) f32
        f_ref[...] = f.astype(f_ref.dtype)

        # Mask overhang rows of the last (partial) tile to 1.0 so they don't
        # contaminate the partial product.  Static no-op when s % ts == 0.
        if s % ts != 0:
            valid = s - pl.program_id(1) * ts
            row = jax.lax.broadcasted_iota(jnp.int32, (ts, 1), 0)
            f = jnp.where(row < valid, f, 1.0)

        # Tree-fold product over the sequence-tile rows (pure VPU elementwise
        # multiplies + static slices; no reliance on a MUL reduction lowering).
        acc = f
        extra = None
        n = ts
        while n > 1:
            if n % 2 == 1:
                last = acc[n - 1:n]
                extra = last if extra is None else extra * last
                n -= 1
            half = n // 2
            acc = acc[:half] * acc[half:n]
            n = half
        if extra is not None:
            acc = acc * extra
        p_ref[...] = acc.astype(p_ref.dtype)

    cost = pl.CostEstimate(
        flops=2 * b * s * in_dims * hid,
        transcendentals=b * s * hid,
        bytes_accessed=(b * s * in_dims * 4          # x read
                        + b * s * hid * out_itemsize  # F write
                        + in_dims * hid * 4           # U1
                        + b * hid * 4                 # hoisted bias
                        + b * n_t * hid * 4),         # partial products
    )

    f_all, c_part = pl.pallas_call(
        kernel,
        out_shape=(
            jax.ShapeDtypeStruct((b, s, hid), out_dtype),       # all gates F_t
            jax.ShapeDtypeStruct((b, n_t, hid), jnp.float32),    # per-tile prod(F)
        ),
        grid=(b, n_t),
        in_specs=[
            pl.BlockSpec((None, ts, in_dims), lambda bi, ti: (bi, ti, 0)),  # x tile
            pl.BlockSpec((None, 1, hid), lambda bi, ti: (bi, 0, 0)),        # hbias
            pl.BlockSpec((in_dims, hid), lambda bi, ti: (0, 0)),            # U1
        ],
        out_specs=(
            pl.BlockSpec((None, ts, hid), lambda bi, ti: (bi, ti, 0)),      # F tile
            pl.BlockSpec((None, 1, hid), lambda bi, ti: (bi, ti, 0)),       # partial
        ),
        compiler_params=pltpu.CompilerParams(
            # No cross-step dependence in the kernel -> both axes parallel
            # (megacore sharding on v7x).
            dimension_semantics=("parallel", "parallel"),
            vmem_limit_bytes=32 * 1024 * 1024,
        ),
        cost_estimate=cost,
    )(inp, hbias, u_f32)

    # Final cell state: c0 * prod over all sequence tiles (tiny reduce).
    c_final = (c0.astype(jnp.float32) * jnp.prod(c_part, axis=1)).astype(c0.dtype)
    return f_all, c_final


def _reference(inp, h0, c0, U1, V1, B1):
    """Pure-JAX reference of the PyTorch forward."""
    b, s, _ = inp.shape
    c_t = c0
    f_list = []
    for t in range(s):
        x_t = inp[:, t, :]
        f_t = jax.nn.sigmoid(x_t @ U1 + h0 @ V1 + B1)
        c_t = c_t * f_t
        f_list.append(f_t)
    return jnp.stack(f_list, axis=1), c_t


if __name__ == "__main__":
    # Small shapes consistent with the module's forward: inp is (batch, seq, in_dims).
    batch, seq, in_dims, hid_dims = 2, 8, 16, 32

    key = jax.random.PRNGKey(0)
    k_inp, k_h, k_c, k_u, k_v, k_b = jax.random.split(key, 6)

    # Deterministic parameter init mimicking init_weights(): U(-stdv, stdv), stdv = 1/sqrt(hid).
    stdv = 1.0 / math.sqrt(hid_dims)
    U1 = jax.random.uniform(k_u, (in_dims, hid_dims), jnp.float32, -stdv, stdv)
    V1 = jax.random.uniform(k_v, (hid_dims, hid_dims), jnp.float32, -stdv, stdv)
    B1 = jax.random.uniform(k_b, (hid_dims,), jnp.float32, -stdv, stdv)

    inp = jax.random.normal(k_inp, (batch, seq, in_dims), jnp.float32)
    h0 = jax.random.normal(k_h, (batch, hid_dims), jnp.float32)   # mem = (h_t, c_t)
    c0 = jax.random.normal(k_c, (batch, hid_dims), jnp.float32)

    f_all, c_final = forget_gate(inp, h0, c0, U1, V1, B1)
    jax.block_until_ready((f_all, c_final))

    f_ref, c_ref = _reference(inp, h0, c0, U1, V1, B1)
    assert f_all.shape == f_ref.shape and c_final.shape == c_ref.shape
    assert jnp.allclose(f_all, f_ref, atol=1e-5, rtol=1e-5), "F_t mismatch vs reference"
    assert jnp.allclose(c_final, c_ref, atol=1e-5, rtol=1e-5), "c_t mismatch vs reference"

    # TODO(synk): the PyTorch forward only prints F_T / c_t and returns nothing; we
    # return (F_all, c_final) instead of emitting per-step prints.
    print("KERNEL_OK")
</pallas_src>

<mosaic_0001>
module attributes {stable_mosaic.version = 11 : i64} {
  func.func @kernel(%arg0: i32, %arg1: i32, %arg2: memref<1x8x16xf32, #tpu.memory_space<vmem>>, %arg3: memref<1x1x32xf32, #tpu.memory_space<vmem>>, %arg4: memref<16x32xf32, #tpu.memory_space<vmem>>, %arg5: memref<1x8x32xf32, #tpu.memory_space<vmem>>, %arg6: memref<1x1x32xf32, #tpu.memory_space<vmem>>) attributes {dimension_semantics = [#tpu.dimension_semantics<parallel>, #tpu.dimension_semantics<parallel>], iteration_bounds = array<i64: 2, 1>, scalar_prefetch = 0 : i64, scratch_operands = 0 : i64, tpu.core_type = #tpu.core_type<tc>, window_params = [{transform_indices = @transform_0, window_bounds = array<i64: 1, 8, 16>}, {transform_indices = @transform_1, window_bounds = array<i64: 1, 1, 32>}, {pipeline_mode = #tpu.pipeline_mode<synchronous>, transform_indices = @transform_2, window_bounds = array<i64: 16, 32>}, {transform_indices = @transform_3, window_bounds = array<i64: 1, 8, 32>}, {transform_indices = @transform_4, window_bounds = array<i64: 1, 1, 32>}]} {
    %c0 = arith.constant 0 : index
    %c0_0 = arith.constant 0 : index
    %c0_1 = arith.constant 0 : index
    %0 = vector.load %arg2[%c0, %c0_0, %c0_1] : memref<1x8x16xf32, #tpu.memory_space<vmem>>, vector<1x8x16xf32>
    %1 = vector.shape_cast %0 : vector<1x8x16xf32> to vector<8x16xf32>
    %c0_2 = arith.constant 0 : index
    %c0_3 = arith.constant 0 : index
    %2 = vector.load %arg4[%c0_2, %c0_3] : memref<16x32xf32, #tpu.memory_space<vmem>>, vector<16x32xf32>
    %cst = arith.constant dense<0.000000e+00> : vector<8x32xf32>
    %3 = tpu.matmul %1, %2, %cst {dimension_numbers = #tpu.dot_dimension_numbers<[1], [0], [0], [1], [0, 0, 1, 1], [], []>} : vector<8x16xf32>, vector<16x32xf32>, vector<8x32xf32> -> vector<8x32xf32>
    %c0_4 = arith.constant 0 : index
    %c0_5 = arith.constant 0 : index
    %c0_6 = arith.constant 0 : index
    %4 = vector.load %arg3[%c0_4, %c0_5, %c0_6] : memref<1x1x32xf32, #tpu.memory_space<vmem>>, vector<1x1x32xf32>
    %5 = vector.shape_cast %4 : vector<1x1x32xf32> to vector<1x32xf32>
    %6 = vector.broadcast %5 : vector<1x32xf32> to vector<8x32xf32>
    %7 = arith.addf %3, %6 : vector<8x32xf32>
    %8 = arith.negf %7 : vector<8x32xf32>
    %9 = math.exp %8 : vector<8x32xf32>
    %cst_7 = arith.constant 1.000000e+00 : f32
    %10 = vector.broadcast %cst_7 : f32 to vector<8x32xf32>
    %11 = arith.addf %10, %9 : vector<8x32xf32>
    %12 = arith.divf %10, %11 : vector<8x32xf32>
    %c0_8 = arith.constant 0 : index
    %c0_9 = arith.constant 0 : index
    %c0_10 = arith.constant 0 : index
    %13 = vector.load %arg5[%c0_8, %c0_9, %c0_10] : memref<1x8x32xf32, #tpu.memory_space<vmem>>, vector<1x8x32xf32>
    %14 = vector.shape_cast %13 : vector<1x8x32xf32> to vector<8x32xf32>
    %15 = vector.shape_cast %12 : vector<8x32xf32> to vector<1x8x32xf32>
    tpu.vector_store %arg5[%c0_8, %c0_9, %c0_10], %15 {strides = array<i32>} : memref<1x8x32xf32, #tpu.memory_space<vmem>>, vector<1x8x32xf32>,
    %16 = vector.extract_strided_slice %12 {offsets = [0, 0], sizes = [4, 32], strides = [1, 1]} : vector<8x32xf32> to vector<4x32xf32>
    %17 = vector.extract_strided_slice %12 {offsets = [4, 0], sizes = [4, 32], strides = [1, 1]} : vector<8x32xf32> to vector<4x32xf32>
    %18 = arith.mulf %16, %17 : vector<4x32xf32>
    %19 = vector.extract_strided_slice %18 {offsets = [0, 0], sizes = [2, 32], strides = [1, 1]} : vector<4x32xf32> to vector<2x32xf32>
    %20 = vector.extract_strided_slice %18 {offsets = [2, 0], sizes = [2, 32], strides = [1, 1]} : vector<4x32xf32> to vector<2x32xf32>
    %21 = arith.mulf %19, %20 : vector<2x32xf32>
    %22 = vector.extract_strided_slice %21 {offsets = [0, 0], sizes = [1, 32], strides = [1, 1]} : vector<2x32xf32> to vector<1x32xf32>
    %23 = vector.extract_strided_slice %21 {offsets = [1, 0], sizes = [1, 32], strides = [1, 1]} : vector<2x32xf32> to vector<1x32xf32>
    %24 = arith.mulf %22, %23 : vector<1x32xf32>
    %c0_11 = arith.constant 0 : index
    %c0_12 = arith.constant 0 : index
    %c0_13 = arith.constant 0 : index
    %25 = vector.load %arg6[%c0_11, %c0_12, %c0_13] : memref<1x1x32xf32, #tpu.memory_space<vmem>>, vector<1x1x32xf32>
    %26 = vector.shape_cast %25 : vector<1x1x32xf32> to vector<1x32xf32>
    %27 = vector.shape_cast %24 : vector<1x32xf32> to vector<1x1x32xf32>
    tpu.vector_store %arg6[%c0_11, %c0_12, %c0_13], %27 {strides = array<i32>} : memref<1x1x32xf32, #tpu.memory_space<vmem>>, vector<1x1x32xf32>,
    return
  }
  func.func @transform_0(%arg0: i32, %arg1: i32) -> (i32, i32, i32) {
    %c0_i32 = arith.constant 0 : i32
    %c0_i32_0 = arith.constant 0 : i32
    return %arg0, %arg1, %c0_i32 : i32, i32, i32
  }
  func.func @transform_1(%arg0: i32, %arg1: i32) -> (i32, i32, i32) {
    %c0_i32 = arith.constant 0 : i32
    %c0_i32_0 = arith.constant 0 : i32
    %c0_i32_1 = arith.constant 0 : i32
    return %arg0, %c0_i32, %c0_i32_0 : i32, i32, i32
  }
  func.func @transform_2(%arg0: i32, %arg1: i32) -> (i32, i32) {
    %c0_i32 = arith.constant 0 : i32
    %c0_i32_0 = arith.constant 0 : i32
    %c0_i32_1 = arith.constant 0 : i32
    return %c0_i32, %c0_i32_0 : i32, i32
  }
  func.func @transform_3(%arg0: i32, %arg1: i32) -> (i32, i32, i32) {
    %c0_i32 = arith.constant 0 : i32
    %c0_i32_0 = arith.constant 0 : i32
    return %arg0, %arg1, %c0_i32 : i32, i32, i32
  }
  func.func @transform_4(%arg0: i32, %arg1: i32) -> (i32, i32, i32) {
    %c0_i32 = arith.constant 0 : i32
    %c0_i32_0 = arith.constant 0 : i32
    return %arg0, %arg1, %c0_i32 : i32, i32, i32
  }
}

</mosaic_0001>

<bundles_post_ra>
// kernel: tpu_custom_call.1
= control target key start
LH: loop header
LB: loop body
LE: loop exit
PB: predicated region body
PF: predicated region fallthrough
CT: control target
= control target key end

     0   :  { %10 = vsyncpa [#allocation3], 0  ;;  %s1123_s0 = inlined_call_operand.hbm [shape: f32[2,8,16], index: 0, kind: input, shape index: {}]   ;;  %s1124_s1 = inlined_call_operand.vmem [shape: f32[2,1,32], index: 1, kind: input, shape index: {}]   ;;  %s1125_s2 = inlined_call_operand.hbm [shape: f32[16,32], index: 2, kind: input, shape index: {}]   ;;  %s1126_s3 = inlined_call_operand.hbm [shape: f32[2,8,32], index: 3, kind: output, shape index: {0}]   ;;  %s1127_s4 = inlined_call_operand.hbm [shape: f32[2,1,32], index: 4, kind: output, shape index: {1}]  }
   0x1   :  { %12 = vsyncpa [#allocation3 + $0x1], 0 }
   0x2   :  { %13 = vsyncpa [#allocation6], 0 }
   0x3   :  { %14 = vsyncpa [#allocation4], 0 }
   0x4   :  { %16 = vsyncpa [#allocation4 + $0x1], 0 }
   0x5   :  { %17 = vsyncpa [#allocation9], 0 }
   0x6   :  { %19 = vsyncpa [#allocation9 + $0x1], 0  ;;  %s869_s15 = smov 0   ;;  %s871_s16 = smov 0  }
   0x7   :  { %s873_s17 = smov 0   ;;  %s875_s18 = smov 0  }
   0x8   :  { %s877_s19 = smov 0   ;;  %s879_s20 = smov 0  }
   0x9 LB: > { %s538_s21 = sadd.s32 4294967295, %s833_s20   ;;  %s539_s22 = sadd.s32 4294967294, %s833_s20   ;;  %s833_s20 = sphi %s879_s20, %s25_s20   ;;  %s829_s19 = sphi %s877_s19, %s1151_s19   ;;  %s825_s18 = sphi %s875_s18, %s1150_s18   ;;  %s821_s17 = sphi %s873_s17, %s1149_s17   ;;  %s817_s16 = sphi %s871_s16, %s1148_s16   ;;  %s813_s15 = sphi %s869_s15, %s1147_s15  }
   0xa   : > { %p59_p0 = scmp.ne.s32.totalorder %s817_s16, %s813_s15  ;;  %p903_p1 = scmp.eq.s32.totalorder %s538_s21, 0 }
   0xb   : > { %p907_p2 = scmp.eq.s32.totalorder %s538_s21, 1  ;;  %p138_p3 = scmp.eq.s32.totalorder %s539_s22, 1 }
   0xc   : > { %s1132_s23 = scalar_select %p903_p1, 1, 0 }
   0xd   : > { %s1133_s24 = scalar_select %p907_p2, 1, 0 }
   0xe   : > { %p913_p4 = por %p903_p1, %p59_p0  ;;  %p540_p5 = scmp.ge.s32.totalorder %s833_s20, 1 }
   0xf   : > { %p918_p6 = por %p138_p3, %p59_p0  ;;  %p173_p7 = scmp.lt.s32.totalorder %s833_s20, 3 }
  0x10   : > { %s1134_s25 = scalar_select %p913_p4, 1, 0 }
  0x11   : > { %s1135_s26 = scalar_select %p918_p6, 1, 0 }
  0x12   : > { %p923_p8 = pnand %p540_p5, %p173_p7  ;;  %s835_s28 = smov [#allocation5]  }
  0x13   : > { %s185_s29 = sshll.u32 %s835_s28, 4  ;;  %s37_s5 = sadd.s32 1, %s829_s19  ;;  %s186_s29 = int_to_ptr.vmem [resolvable:$true] %s185_s29 }
  0x14   : > { %s1136_s27 = scalar_select %p923_p8, 1, 0 }
  0x15   : > { %p580_p9 = pneg %p923_p8  ;;  %s657_s8 = scalar_lea.hbm %s1125_s2, 256 }
  0x16   : > { %p658_p12 = scmp.ne.s32.totalorder %s1125_s2, %s657_s8  ;;  %p664_p5 = scmp.lt.u32.totalorder %s657_s8, %s1125_s2 }
  0x17   : > { %p932_p11 = pnand %p580_p9, %p903_p1 }
  0x19   : > { %p659_p13 = pneg %p932_p11 }
  0x1b   : > { %p660_p0 = pnand %p659_p13, %p658_p12 }
  0x1d   : > { %p661_p3 = pneg %p660_p0 }
  0x1f   : > { %p666_p7 = pnand %p664_p5, %p661_p3 }
  0x21   : > { %669 = shalt.err (!%p666_p7)
}
  0x22   : > { %s670_s13 = scalar_lea.vmem %s186_s29, 256  ;;  %p678_p1 = scmp.lt.s32.totalorder %s186_s29, %s186_s29 }
  0x23   : > { %p671_p9 = scmp.ne.s32.totalorder %s186_s29, %s670_s13  ;;  %p679_p4 = scmp.lt.s32.totalorder %s670_s13, %s670_s13 }
  0x25   : > { %p673_p10 = pnand %p671_p9, %p659_p13  ;;  %p680_p8 = por %p679_p4, %p678_p1 }
  0x27   : > { %p674_p6 = pneg %p673_p10 }
  0x29   : > { %p681_p2 = pnand %p680_p8, %p674_p6 }
  0x2b   : > { %684 = shalt.err (!%p681_p2)
}
  0x2c   : > { %s836_s14 = smov 128   ;;  %s837_s21 = smov 8  }
  0x2d   : > { %583 = dma.hbm_to_vmem [thread:$0]  (!%p932_p11), %s1125_s2, 256, %s186_s29, [#allocation6], %s836_s14, %s836_s14, %s837_s21  }
  0x2e   : > { %p39_p1 = scmp.ge.s32.totalorder %s37_s5, 2  ;;  %s46_s6 = sadd.s32 1, %s821_s17 }
  0x2f   : > { %p53_p2 = scmp.ne.s32.totalorder %s821_s17, %s817_s16  ;;  %p54_p4 = scmp.eq.s32.totalorder %s833_s20, 0 }
  0x30   : > { %s1153_s5 = smov (%p39_p1, %s37_s5), 0  ;;  %p1139_p8 = scmp.ne.s32.totalorder %s1133_s24, 0 }
  0x31   : > { %p959_p6 = por %p54_p4, %p53_p2  ;;  %s41_s30 = ssub.s32 %s829_s19, %s1153_s5 }
  0x32   : > { %p965_p10 = por %p1139_p8, %p53_p2  ;;  %p596_p12 = scmp.lt.s32.totalorder %s833_s20, 2 }
  0x33   : > { %p44_p11 = scmp.eq.s32.totalorder %s41_s30, 0  ;;  %s199_s29 = sand.u32 1, %s821_s17  }
  0x34   : > { %s543_s9 = sshll.u32 %s199_s29, 3  ;;  %s544_s11 = sshll.u32 %s829_s19, 7 }
  0x35   : > { %s974_s10 = scalar_select %p44_p11, %s821_s17, %s46_s6  }
  0x36   : > { %s980_s14 = scalar_lea.hbm %s1123_s0, %s544_s11  ;;  %s203_s24 = scalar_lea.vmem [#allocation2], %s543_s9 }
  0x37   : > { %s211_s21 = sshll.u32 %s203_s24, 4  ;;  %p986_p13 = pnand %p596_p12, %p959_p6  ;;  %s982_s21 = int_to_ptr.vmem [resolvable:$true] %s211_s21 }
  0x38   : > { %s200_s28 = scalar_lea.sflag [#allocation3], %s199_s29  ;;  %s685_s6 = scalar_lea.hbm %s980_s14, 128 }
  0x39   : > { %p686_p0 = scmp.ne.s32.totalorder %s980_s14, %s685_s6  ;;  %p687_p3 = pneg %p986_p13 }
  0x3a   : > { %s690_s11 = scalar_lea.hbm %s1123_s0, 256  ;;  %p691_p9 = scmp.lt.u32.totalorder %s980_s14, %s1123_s0 }
  0x3b   : > { %p688_p5 = pnand %p687_p3, %p686_p0  ;;  %p692_p1 = scmp.lt.u32.totalorder %s690_s11, %s685_s6 }
  0x3c   : > { %p694_p4 = scmp.lt.u32.totalorder %s685_s6, %s980_s14 }
  0x3d   : > { %p689_p7 = pneg %p688_p5  ;;  %p693_p2 = por %p692_p1, %p691_p9 }
  0x3f   : > { %p695_p6 = por %p694_p4, %p693_p2 }
  0x41   : > { %p696_p8 = pnand %p695_p6, %p689_p7 }
  0x43   : > { %699 = shalt.err (!%p696_p8)
}
  0x44   : > { %s700_s29 = scalar_lea.vmem %s982_s21, 128  ;;  %s838_s13 = smov [#allocation2]  }
  0x45   : > { %p701_p12 = scmp.ne.s32.totalorder %s982_s21, %s700_s29  ;;  %s705_s24 = sshll.u32 %s838_s13, 4  ;;  %s706_s24 = int_to_ptr.vmem [resolvable:$false] %s705_s24 }
  0x46   : > { %s707_s30 = scalar_lea.vmem %s706_s24, 256  ;;  %p708_p5 = scmp.lt.s32.totalorder %s982_s21, %s706_s24 }
  0x47   : > { %p703_p11 = pnand %p701_p12, %p687_p3  ;;  %p709_p9 = scmp.lt.s32.totalorder %s707_s30, %s700_s29 }
  0x49   : > { %p704_p0 = pneg %p703_p11  ;;  %p710_p1 = por %p709_p9, %p708_p5 }
  0x4b   : > { %p711_p2 = pnand %p710_p1, %p704_p0 }
  0x4d   : > { %714 = shalt.err (!%p711_p2)
}
  0x4e   : > { %587 = dma.hbm_to_vmem [thread:$0]  (!%p986_p13), %s980_s14, 128, %s982_s21, %s200_s28  }
  0x4f   : > { %p1142_p7 = scmp.ne.s32.totalorder %s1136_s27, 0 }
  0x50   : > { %s1018_s6 = sand.u32 (!%p1142_p7), 1, %s817_s16   ;;  %p1143_p3 = scmp.ne.s32.totalorder (!%p1142_p7), %s1134_s25, 0 }
  0x51   : > { %226 = sbr.rel (%p1142_p7) target bundleno = 378 (0x17a), region = 32  ;;  %s546_s9 = sshll.u32 (!%p1142_p7), %s1018_s6, 3 }
  0x52   : > { %s229_s11 = scalar_lea.sflag (!%p1142_p7), [#allocation3], %s1018_s6  ;;  %s232_s7 = scalar_lea.vmem (!%p1142_p7), [#allocation2], %s546_s9 }
  0x58   : > { %796 = dma.done.wait (%p1143_p3), %s229_s11, 128  }
  0x59   : > { %798 = vsyncadd (%p1143_p3), %s229_s11, 4294967168  ;;  %p1144_p13 = scmp.ne.s32.totalorder %s1132_s23, 0 }
  0x5b   : > { %800 = dma.done.wait (%p1144_p13), [#allocation6], 256  }
  0x5c   : > { %802 = vsyncadd (%p1144_p13), [#allocation6], 4294967040  ;;  %v839_v0 = vmov 0.0|0.0   ;;  %vm840_vm0 = vmmov 0   ;;  %v841_v1 = vmov 0.0   ;;  %v272_v2 = vld [vmem:[#allocation5] sm:$0xff] }
  0x5d   : > { %567 = vmatprep.subr.bf16.mxu0 %v839_v0  ;;  %564 = vmatprep.mubr.msk.f32.mxu0 %vm840_vm0, %v841_v1  ;;  %v273_v3 = vld [vmem:[#allocation5 + $0x8] sm:$0xff]  ;;  %v271_v5 = vld [vmem:[%s232_s7] sm:$0xff]  ;;  %vm281_vm1 = vcmask 130048   ;;  %p268_p4 = scmp.lt.s32.totalorder %s825_s18, 1  ;;  %s553_s21 = sshll.u32 %s825_s18, 7  ;;  %vm361_vm2 = vcmask 261120  }
  0x5e   : > { %v568_v4 = vpack.c.bf16 %v273_v3, %v272_v2  ;;  %s261_s22 = scalar_lea.vmem [#allocation7], %s546_s9  ;;  %s1043_s13 = scalar_lea.hbm %s1126_s3, %s553_s21 }
  0x5f   : > { %s269_s25 = scalar_select %p268_p4, %s825_s18, 1 }
  0x60   : > { %569 = vmatpush3.bf16.msra.mxu0 %v568_v4  ;;  %s396_s28 = sshll.u32 %s261_s22, 4  ;;  %s378_s24 = scalar_lea.sflag [#allocation4], %s1018_s6  ;;  %s1045_s28 = int_to_ptr.vmem [resolvable:$true] %s396_s28 }
  0x61   : > { %s270_s14 = scalar_lea.vmem %s1124_s1, %s269_s25  ;;  %s715_s30 = scalar_lea.vmem %s1045_s28, 128 }
  0x62   : > { %v549_v6 = vld [vmem:[%s270_s14] ss:$0 sm:$0xff]  ;;  %p716_p6 = scmp.ne.s32.totalorder %s1045_s28, %s715_s30  ;;  %s842_s9 = smov [#allocation7]  }
  0x63   : > { %565 = vmatmul.mubr.msk.f32.vlgmr.msra.gmra.mrb[0].mxu0 %vm281_vm1, %v271_v5  ;;  %s719_s11 = sshll.u32 %s842_s9, 4  ;;  %s720_s11 = int_to_ptr.vmem [resolvable:$false] %s719_s11 }
  0x64   : > { %p717_p8 = pnand %p716_p6, %p965_p10  ;;  %s721_s7 = scalar_lea.vmem %s720_s11, 256 }
  0x65   : > { %p722_p11 = scmp.lt.s32.totalorder %s1045_s28, %s720_s11  ;;  %p723_p0 = scmp.lt.s32.totalorder %s721_s7, %s715_s30 }
  0x66   : > { %p718_p12 = pneg %p717_p8 }
  0x67   : > { %p724_p5 = por %p723_p0, %p722_p11 }
  0x69   : > { %p725_p9 = pnand %p724_p5, %p718_p12 }
 0x136   : > { %v351_v7 = vpop.f32.mrb[0].mxu0 }
 0x137   : > { %v352_v8 = vadd.f32 %v549_v6, %v351_v7  ;;  %v566_v9 = vpop.f32.mrb[1].mxu0 }
 0x139   : > { %v551_v10 = vmul.f32 -1.442695, %v352_v8 }
 0x13b   : > { %653 = vpow2.f32 %v551_v10 }
 0x145   : > { %v654_v11 = vpop.eup %653 }
 0x146   : > { %v358_v12 = vadd.f32 1.0, %v654_v11 }
 0x148   : > { %655 = vrcp.f32 %v358_v12 }
 0x152   : > { %v656_v13 = vpop.eup %655 }
 0x153   : > { %362 = vst.msk [vmem:[%s261_s22] sm:$0xff] %vm361_vm2, %v656_v13  ;;  %v364_v14 = vrot.slane %v656_v13, 4 }
 0x154   : > { %728 = shalt.err (!%p725_p9)
}
 0x155   : > { %s729_s25 = scalar_lea.hbm %s1043_s13, 128  ;;  %s733_s14 = scalar_lea.hbm %s1126_s3, 256 }
 0x156   : > { %p730_p1 = scmp.ne.s32.totalorder %s1043_s13, %s729_s25  ;;  %p734_p3 = scmp.lt.u32.totalorder %s1043_s13, %s1126_s3 }
 0x157   : > { %p735_p13 = scmp.lt.u32.totalorder %s733_s14, %s729_s25  ;;  %p737_p6 = scmp.lt.u32.totalorder %s729_s25, %s1043_s13 }
 0x158   : > { %p731_p2 = pnand %p730_p1, %p965_p10 }
 0x159   : > { %p736_p4 = por %p735_p13, %p734_p3 }
 0x15a   : > { %p732_p7 = pneg %p731_p2 }
 0x15b   : > { %p738_p8 = por %p737_p6, %p736_p4 }
 0x15d   : > { %p739_p12 = pnand %p738_p8, %p732_p7 }
 0x15f   : > { %742 = shalt.err (!%p739_p12)
}
 0x160   : > { %576 = dma.vmem_to_hbm [thread:$0]  (%p965_p10), %s1045_s28, 128, %s1043_s13, %s378_s24   ;;  %v366_v15 = vmul.f32 %v656_v13, %v364_v14  ;;  %vm375_vm3 = vcmask 253952  }
 0x161   : > { %s554_s12 = sshll.u32 %s825_s18, 4  ;;  %s267_s29 = scalar_lea.vmem [#allocation8], %s1018_s6 }
 0x162   : > { %v368_v16 = vrot.slane %v366_v15, 2  ;;  %s410_s30 = sshll.u32 %s267_s29, 4  ;;  %s1074_s7 = scalar_lea.hbm %s1127_s4, %s554_s12  ;;  %s1076_s30 = int_to_ptr.vmem [resolvable:$true] %s410_s30 }
 0x163   : > { %s383_s28 = scalar_lea.sflag [#allocation9], %s1018_s6  ;;  %s743_s13 = scalar_lea.vmem %s1076_s30, 16 }
 0x164   : > { %v370_v17 = vmul.f32 %v368_v16, %v366_v15  ;;  %p744_p11 = scmp.ne.s32.totalorder %s1076_s30, %s743_s13  ;;  %s843_s18 = smov [#allocation8]  }
 0x165   : > { %s747_s24 = sshll.u32 %s843_s18, 4  ;;  %s748_s24 = int_to_ptr.vmem [resolvable:$false] %s747_s24 }
 0x166   : > { %v372_v18 = vrot.slane %v370_v17, 1  ;;  %p745_p0 = pnand %p744_p11, %p965_p10  ;;  %s749_s25 = scalar_lea.vmem %s748_s24, 32 }
 0x167   : > { %p750_p9 = scmp.lt.s32.totalorder %s1076_s30, %s748_s24  ;;  %p751_p1 = scmp.lt.s32.totalorder %s749_s25, %s743_s13 }
 0x168   : > { %v374_v19 = vmul.f32 %v372_v18, %v370_v17  ;;  %p746_p5 = pneg %p745_p0 }
 0x169   : > { %p752_p2 = por %p751_p1, %p750_p9 }
 0x16a   : > { %376 = vst.msk [vmem:[%s267_s29] sm:$0x1] %vm375_vm3, %v374_v19 }
 0x16b   : > { %p753_p7 = pnand %p752_p2, %p746_p5 }
 0x16d   : > { %756 = shalt.err (!%p753_p7)
}
 0x16e   : > { %s757_s6 = scalar_lea.hbm %s1074_s7, 16  ;;  %s761_s14 = scalar_lea.hbm %s1127_s4, 32 }
 0x16f   : > { %p758_p3 = scmp.ne.s32.totalorder %s1074_s7, %s757_s6  ;;  %p762_p6 = scmp.lt.u32.totalorder %s1074_s7, %s1127_s4 }
 0x170   : > { %p763_p8 = scmp.lt.u32.totalorder %s761_s14, %s757_s6  ;;  %p765_p11 = scmp.lt.u32.totalorder %s757_s6, %s1074_s7 }
 0x171   : > { %p759_p13 = pnand %p758_p3, %p965_p10 }
 0x172   : > { %p764_p12 = por %p763_p8, %p762_p6 }
 0x173   : > { %p760_p4 = pneg %p759_p13 }
 0x174   : > { %p766_p0 = por %p765_p11, %p764_p12 }
 0x176   : > { %p767_p5 = pnand %p766_p0, %p760_p4 }
 0x178   : > { %770 = shalt.err (!%p767_p5)
}
 0x179   : > { %577 = dma.vmem_to_hbm [thread:$0]  (%p965_p10), %s1076_s30, 16, %s1074_s7, %s383_s28  }
 0x17a PF: > { %s422_s12 = sand.u32 1, %s813_s15   ;;  %p1145_p9 = scmp.ne.s32.totalorder %s1135_s26, 0 }
 0x17b   : > { %p1146_p1 = scmp.ge.s32.totalorder %s833_s20, 2  ;;  %s423_s29 = scalar_lea.sflag [#allocation4], %s422_s12 }
 0x17d   : > { %p589_p2 = pnand %p1146_p1, %p1145_p9 }
 0x17f   : > { %804 = dma.done.wait (!%p589_p2), %s423_s29, 128  }
 0x180   : > { %806 = vsyncadd (!%p589_p2), %s423_s29, 4294967168  ;;  %s432_s9 = scalar_lea.sflag [#allocation9], %s422_s12 }
 0x181   : > { %808 = dma.done.wait (!%p589_p2), %s432_s9, 16  }
 0x182   : > { %810 = vsyncadd (!%p589_p2), %s432_s9, 4294967280  ;;  %s25_s20 = sadd.s32 1, %s833_s20   ;;  %s1147_s15 = smov %s817_s16 }
 0x183   : > { %p22_p7 = scmp.ge.s32.totalorder %s25_s20, 4   ;;  %s1148_s16 = smov %s821_s17 }
 0x184   : > { %s1149_s17 = smov %s974_s10  ;;  %s1150_s18 = smov %s829_s19 }
 0x185   : > { %s1151_s19 = smov %s1153_s5  ;;  %24 = sbr.rel (!%p22_p7) target bundleno = 9 (0x9), region = 101 }
 0x18c   :  { %436 = vsyncpa [#allocation3], 1 }
 0x18d   :  { %438 = vsyncpa [#allocation3 + $0x1], 1 }
 0x18e   :  { %439 = vsyncpa [#allocation6], 1 }
 0x18f   :  { %440 = vsyncpa [#allocation4], 1 }
 0x190   :  { %442 = vsyncpa [#allocation4 + $0x1], 1 }
 0x191   :  { %443 = vsyncpa [#allocation9], 1 }
 0x192   :  { %445 = vsyncpa [#allocation9 + $0x1], 1 }

</bundles_post_ra>
